<compile_context>
chip_gen: v6e
topology: v6e:2x2x1
jax: 0.10.0
libtpu: 0.0.40
codegen_flags: <defaults>
</compile_context>

<pallas_src>
import math
import numpy as np
import jax
import jax.numpy as jnp
from jax.experimental import pallas as pl
from jax.experimental.pallas import tpu as pltpu


# ----------------------------------------------------------------------------- #
# Noise schedule (numpy glue, mirrors set_new_noise_schedule / 'linear')
# ----------------------------------------------------------------------------- #
def make_beta_schedule_linear(n_timestep, linear_start=1e-4, linear_end=2e-2):
    return np.linspace(linear_start, linear_end, n_timestep, dtype=np.float64)


def build_schedule(n_timestep):
    betas = make_beta_schedule_linear(n_timestep)
    alphas = 1.0 - betas
    alphas_cumprod = np.cumprod(alphas, axis=0)
    sqrt_alphas_cumprod_prev = np.sqrt(np.append(1.0, alphas_cumprod))
    return {
        "sqrt_alphas_cumprod_prev": sqrt_alphas_cumprod_prev,
        "num_timesteps": int(n_timestep),
    }


# ----------------------------------------------------------------------------- #
# Fused Pallas kernel: q_sample + synthetic denoise_fn (1x1 conv) + L1-sum loss
# ----------------------------------------------------------------------------- #
def _p_losses_kernel(hr_ref, sr_ref, noise_ref, a_ref, s_ref, bg_ref,
                     wsr_ref, wx_ref, loss_ref):
    """Whole-array VMEM refs (no grid).

    hr/sr/noise : (B*C, P)      a/s/bg : (B*C, 1)
    wsr/wx      : (B*C, B*C)    block-diagonal kron(I_B, W)
    loss        : (1, 1)
    """
    noise = noise_ref[...]                              # (B*C, P)

    # q_sample — one dense fused multiply-add across the whole batch (VPU).
    x_noisy = a_ref[...] * hr_ref[...] + s_ref[...] * noise

    # 1x1 conv over concat([SR, x_noisy]) as two small MXU matmuls with
    # block-diagonal weights (per-batch shared (C,C) conv kernels expanded
    # host-side to (B*C, B*C)).  f32 at HIGHEST precision to match the ref.
    x_recon = (
        jnp.dot(wsr_ref[...], sr_ref[...],
                precision=jax.lax.Precision.HIGHEST,
                preferred_element_type=jnp.float32)
        + jnp.dot(wx_ref[...], x_noisy,
                  precision=jax.lax.Precision.HIGHEST,
                  preferred_element_type=jnp.float32)
        + bg_ref[...])                                  # a*gamma + bias (hoisted)

    # L1Loss(reduction='sum')(noise, x_recon) — XLU cross-lane reduce.
    loss_ref[...] = jnp.sum(jnp.abs(noise - x_recon), keepdims=True)


def p_losses_pallas(hr_nchw, sr_nchw, noise_nchw, csac, w_sr, w_x, bias, gamma):
    B, C, H, W = hr_nchw.shape
    P = H * W

    # Sublane-/lane-dense layout: (B*C, P) = (8, 256) for the default config.
    hr = hr_nchw.reshape(B * C, P).astype(jnp.float32)
    sr = sr_nchw.reshape(B * C, P).astype(jnp.float32)
    noise = noise_nchw.reshape(B * C, P).astype(jnp.float32)

    csac = csac.astype(jnp.float32)                         # (B,)
    a_col = jnp.repeat(csac, C).reshape(B * C, 1)           # per-row scale
    s_col = jnp.sqrt(1.0 - a_col * a_col)                   # hoisted sqrt(1-a^2)
    bg_col = (csac[:, None] * gamma.reshape(1, C)
              + bias.reshape(1, C)).reshape(B * C, 1)       # a*gamma + bias

    # Block-diagonal expansion of the shared (C,C) 1x1-conv weights so the
    # per-batch contraction is a single matmul over the (B*C, P) layout.
    eye_b = jnp.eye(B, dtype=jnp.float32)
    w_sr_bd = jnp.kron(eye_b, w_sr.astype(jnp.float32))     # (B*C, B*C)
    w_x_bd = jnp.kron(eye_b, w_x.astype(jnp.float32))       # (B*C, B*C)

    loss = pl.pallas_call(
        _p_losses_kernel,
        out_shape=jax.ShapeDtypeStruct((1, 1), jnp.float32),
        # No grid, no BlockSpecs: whole arrays live in VMEM (~25 KB total),
        # single invocation => no per-grid-step overhead, no accumulator RMW.
    )(hr, sr, noise, a_col, s_col, bg_col, w_sr_bd, w_x_bd)
    return loss[0, 0]


# Jit the full device path so reshapes / precompute / kernel launch stay fused.
_p_losses_jit = jax.jit(p_losses_pallas)


# ----------------------------------------------------------------------------- #
# Pure-JAX reference for validation
# ----------------------------------------------------------------------------- #
def p_losses_ref(hr, sr, noise, csac, w_sr, w_x, bias, gamma):
    B, C, H, W = hr.shape
    a = csac.reshape(B, 1, 1, 1)
    x_noisy = a * hr + jnp.sqrt(1.0 - a ** 2) * noise
    hi = jax.lax.Precision.HIGHEST
    x_recon = (jnp.einsum('oc,bchw->bohw', w_sr, sr, precision=hi)
               + jnp.einsum('oc,bchw->bohw', w_x, x_noisy, precision=hi)
               + a * gamma.reshape(1, C, 1, 1)
               + bias.reshape(1, C, 1, 1))
    return jnp.sum(jnp.abs(noise - x_recon))


# ----------------------------------------------------------------------------- #
# GaussianDiffusion (JAX / Pallas version of the PyTorch module)
# ----------------------------------------------------------------------------- #
class GaussianDiffusionPallas:
    def __init__(self, channels=4, image_size=16, n_timestep=100,
                 loss_type='l1', loss_name='wd', under_step_wd_loss=500,
                 conditional=True, seed=0):
        self.channels = channels
        self.image_size = image_size
        self.loss_type = loss_type
        self.loss_name = loss_name
        self.under_step_wd_loss = under_step_wd_loss
        self.conditional = conditional

        sched = build_schedule(n_timestep)
        self.num_timesteps = sched["num_timesteps"]
        self.sqrt_alphas_cumprod_prev = sched["sqrt_alphas_cumprod_prev"]

        # Deterministic synthetic denoise_fn parameters: 1x1 conv over 2C -> C
        # channels plus a noise-level-conditioned bias.
        key = jax.random.PRNGKey(seed)
        k1, k2, k3, k4 = jax.random.split(key, 4)
        C = channels
        self.w_sr = jax.random.normal(k1, (C, C), jnp.float32) * 0.1
        self.w_x = (jax.random.normal(k2, (C, C), jnp.float32) * 0.1
                    + jnp.eye(C, dtype=jnp.float32))
        self.bias = jax.random.normal(k3, (C, 1), jnp.float32) * 0.05
        self.gamma = jax.random.normal(k4, (C, 1), jnp.float32) * 0.05

        self._np_rng = np.random.default_rng(seed)

    def p_losses(self, x_in, noise=None, noise_key=None):
        x_start = x_in['HR']
        b = x_start.shape[0]

        # Timestep sampling (host-side Python int, mirrors np.random.randint).
        t = int(self._np_rng.integers(1, self.num_timesteps + 1))

        # continuous_sqrt_alpha_cumprod ~ Uniform between schedule[t-1] and
        # schedule[t].  The schedule is decreasing, so emulate legacy
        # np.random.uniform(low, high) with low > high as lo + (hi - lo) * u
        # (device-side, avoids the Generator.uniform "high - low < 0" error).
        lo = float(self.sqrt_alphas_cumprod_prev[t - 1])
        hi = float(self.sqrt_alphas_cumprod_prev[t])
        if noise_key is None:
            noise_key = jax.random.PRNGKey(1234)
        k_u, k_n = jax.random.split(noise_key)
        u = jax.random.uniform(k_u, (b,), jnp.float32)
        csac = lo + (hi - lo) * u

        if noise is None:
            noise = jax.random.normal(k_n, x_start.shape, x_start.dtype)

        origin_loss = _p_losses_jit(
            x_start, x_in['SR'], noise, csac,
            self.w_sr, self.w_x, self.bias, self.gamma)

        wd_loss = jnp.float32(0.0)
        if self.loss_name == 'wd' and t < self.under_step_wd_loss:
            # TODO(synk): WassersteinDistanceLoss uses gudhi CubicalComplex persistent
            # homology on CPU; no Pallas equivalent, contributes 0 here.
            pass

        self.origin_loss = origin_loss
        self.wd_loss = wd_loss
        return origin_loss + wd_loss, (noise, csac)

    def forward(self, x_in):
        return self.p_losses(x_in)

    def get_each_loss(self):
        return self.origin_loss, self.wd_loss


# ----------------------------------------------------------------------------- #
if __name__ == "__main__":
    B, C, H, W = 2, 4, 16, 16

    key = jax.random.PRNGKey(0)
    k_hr, k_sr = jax.random.split(key)
    hr = jax.random.normal(k_hr, (B, C, H, W), jnp.float32)
    sr = jax.random.normal(k_sr, (B, C, H, W), jnp.float32)

    model = GaussianDiffusionPallas(channels=C, image_size=H, n_timestep=100)

    loss, (noise, csac) = model.forward({'HR': hr, 'SR': sr})
    loss = jax.block_until_ready(loss)

    # Validate against pure-JAX reference.
    ref = p_losses_ref(hr, sr, noise, csac,
                       model.w_sr, model.w_x, model.bias, model.gamma)
    ref = jax.block_until_ready(ref)
    np.testing.assert_allclose(np.asarray(loss), np.asarray(ref),
                               rtol=5e-4, atol=5e-3)

    print("KERNEL_OK")
</pallas_src>

<mosaic_0001>
module attributes {stable_mosaic.version = 11 : i64} {
  func.func @_p_losses_kernel(%arg0: memref<8x256xf32, #tpu.memory_space<vmem>>, %arg1: memref<8x256xf32, #tpu.memory_space<vmem>>, %arg2: memref<8x256xf32, #tpu.memory_space<vmem>>, %arg3: memref<8x1xf32, #tpu.memory_space<vmem>>, %arg4: memref<8x1xf32, #tpu.memory_space<vmem>>, %arg5: memref<8x1xf32, #tpu.memory_space<vmem>>, %arg6: memref<8x8xf32, #tpu.memory_space<vmem>>, %arg7: memref<8x8xf32, #tpu.memory_space<vmem>>, %arg8: memref<1x1xf32, #tpu.memory_space<vmem>>) attributes {dimension_semantics = [], scalar_prefetch = 0 : i64, scratch_operands = 0 : i64, tpu.core_type = #tpu.core_type<tc>} {
    %c0 = arith.constant 0 : index
    %c0_0 = arith.constant 0 : index
    %0 = vector.load %arg2[%c0, %c0_0] : memref<8x256xf32, #tpu.memory_space<vmem>>, vector<8x256xf32>
    %c0_1 = arith.constant 0 : index
    %c0_2 = arith.constant 0 : index
    %1 = vector.load %arg3[%c0_1, %c0_2] : memref<8x1xf32, #tpu.memory_space<vmem>>, vector<8x1xf32>
    %c0_3 = arith.constant 0 : index
    %c0_4 = arith.constant 0 : index
    %2 = vector.load %arg0[%c0_3, %c0_4] : memref<8x256xf32, #tpu.memory_space<vmem>>, vector<8x256xf32>
    %3 = vector.broadcast %1 : vector<8x1xf32> to vector<8x256xf32>
    %4 = arith.mulf %3, %2 : vector<8x256xf32>
    %c0_5 = arith.constant 0 : index
    %c0_6 = arith.constant 0 : index
    %5 = vector.load %arg4[%c0_5, %c0_6] : memref<8x1xf32, #tpu.memory_space<vmem>>, vector<8x1xf32>
    %6 = vector.broadcast %5 : vector<8x1xf32> to vector<8x256xf32>
    %7 = arith.mulf %6, %0 : vector<8x256xf32>
    %8 = arith.addf %4, %7 : vector<8x256xf32>
    %c0_7 = arith.constant 0 : index
    %c0_8 = arith.constant 0 : index
    %9 = vector.load %arg6[%c0_7, %c0_8] : memref<8x8xf32, #tpu.memory_space<vmem>>, vector<8x8xf32>
    %c0_9 = arith.constant 0 : index
    %c0_10 = arith.constant 0 : index
    %10 = vector.load %arg1[%c0_9, %c0_10] : memref<8x256xf32, #tpu.memory_space<vmem>>, vector<8x256xf32>
    %cst = arith.constant dense<0.000000e+00> : vector<8x256xf32>
    %11 = tpu.matmul %9, %10, %cst {dimension_numbers = #tpu.dot_dimension_numbers<[1], [0], [0], [1], [0, 0, 1, 1], [], []>, precision = #tpu.contract_precision<fp32>} : vector<8x8xf32>, vector<8x256xf32>, vector<8x256xf32> -> vector<8x256xf32>
    %c0_11 = arith.constant 0 : index
    %c0_12 = arith.constant 0 : index
    %12 = vector.load %arg7[%c0_11, %c0_12] : memref<8x8xf32, #tpu.memory_space<vmem>>, vector<8x8xf32>
    %cst_13 = arith.constant dense<0.000000e+00> : vector<8x256xf32>
    %13 = tpu.matmul %12, %8, %cst_13 {dimension_numbers = #tpu.dot_dimension_numbers<[1], [0], [0], [1], [0, 0, 1, 1], [], []>, precision = #tpu.contract_precision<fp32>} : vector<8x8xf32>, vector<8x256xf32>, vector<8x256xf32> -> vector<8x256xf32>
    %14 = arith.addf %11, %13 : vector<8x256xf32>
    %c0_14 = arith.constant 0 : index
    %c0_15 = arith.constant 0 : index
    %15 = vector.load %arg5[%c0_14, %c0_15] : memref<8x1xf32, #tpu.memory_space<vmem>>, vector<8x1xf32>
    %16 = vector.broadcast %15 : vector<8x1xf32> to vector<8x256xf32>
    %17 = arith.addf %14, %16 : vector<8x256xf32>
    %18 = arith.subf %0, %17 : vector<8x256xf32>
    %19 = math.absf %18 : vector<8x256xf32>
    %20 = vector.shape_cast %19 : vector<8x256xf32> to vector<1x8x256xf32>
    %cst_16 = arith.constant dense<0.000000e+00> : vector<1xf32>
    %21 = vector.multi_reduction <add>, %20, %cst_16 [1, 2] : vector<1x8x256xf32> to vector<1xf32>
    %22 = vector.shape_cast %21 : vector<1xf32> to vector<1x1x1xf32>
    %23 = vector.extract %22[0, 0, 0] : f32 from vector<1x1x1xf32>
    %24 = vector.broadcast %23 : f32 to vector<1x1xf32>
    %c0_17 = arith.constant 0 : index
    %c0_18 = arith.constant 0 : index
    %25 = vector.load %arg8[%c0_17, %c0_18] : memref<1x1xf32, #tpu.memory_space<vmem>>, vector<1x1xf32>
    tpu.vector_store %arg8[%c0_17, %c0_18], %24 {strides = array<i32>} : memref<1x1xf32, #tpu.memory_space<vmem>>, vector<1x1xf32>,
    return
  }
}

</mosaic_0001>

<bundles_post_ra>
// kernel: p_losses_pallas.1
= control target key start
LH: loop header
LB: loop body
LE: loop exit
PB: predicated region body
PF: predicated region fallthrough
CT: control target
= control target key end

     0   :  { %v1061_v1 = vmov 0   ;;  %s1194_s0 = inlined_call_operand.vmem [shape: f32[8,256], index: 0, kind: input, shape index: {}]   ;;  %s1195_s1 = inlined_call_operand.vmem [shape: f32[8,256], index: 1, kind: input, shape index: {}]   ;;  %s1196_s2 = inlined_call_operand.vmem [shape: f32[8,256], index: 2, kind: input, shape index: {}]   ;;  %s1197_s3 = inlined_call_operand.vmem [shape: f32[8,1], index: 3, kind: input, shape index: {}]   ;;  %s1198_s4 = inlined_call_operand.vmem [shape: f32[8,1], index: 4, kind: input, shape index: {}]   ;;  %s1199_s5 = inlined_call_operand.vmem [shape: f32[8,1], index: 5, kind: input, shape index: {}]   ;;  %s1200_s6 = inlined_call_operand.vmem [shape: f32[8,8], index: 6, kind: input, shape index: {}]   ;;  %s1201_s7 = inlined_call_operand.vmem [shape: f32[8,8], index: 7, kind: input, shape index: {}]   ;;  %s1202_s8 = inlined_call_operand.hbm [shape: f32[1,1], index: 8, kind: output, shape index: {}]  }
   0x1   :  { %v32_v0 = vld [vmem:[%s1197_s3] sm:$0xff]  ;;  %1037 = vset.pattern.permute.xlu0 %v1061_v1  ;;  %1038 = vset.pattern.permute.xlu1 %v1061_v1 }
   0x2   :  { %37 = vperm.xlu0 %1037, %v32_v0  }
   0x3   :  { %13 = vsyncpa [#allocation3], 0  ;;  %v42_v2 = vld [vmem:[%s1198_s4] sm:$0xff]  ;;  %v1062_v3 = vmov 0.0   ;;  %vm56_vm0 = vcmask 64512   ;;  %v34_v13 = vld [vmem:[%s1194_s0 + $0x8] sm:$0xff] }
   0x4   :  { %126 = vmatprep.mubr.f32.mxu0 %v1062_v3  ;;  %212 = vmatprep.mubr.f32.mxu1 %v1062_v3  ;;  %v993_v4 = vld [vmem:[%s1199_s5] sm:$0xff]  ;;  %v1146_v15 = vld [vmem:[%s1196_s2 + $0x8] sm:$0xff]  ;;  %vm1016_vm1 = vcmask 0  }
   0x5   :  { %996 = vperm.xlu1 %1038, %v993_v4   ;;  %v55_v5 = vld [vmem:[%s1201_s7] sm:$0xff]  ;;  %v54_v19 = vld [vmem:[%s1195_s1 + $0x8] sm:$0xff] }
   0x6   :  { %45 = vperm.xlu0 %1037, %v42_v2   ;;  %v58_v6 = vsel %vm56_vm0, %v55_v5, 0  ;;  %v33_v11 = vld [vmem:[%s1194_s0] sm:$0xff]  ;;  %v1156_v27 = vand.u32 4294901760, %v54_v19 }
   0x7   :  { %v1123_v7 = vand.u32 4294901760, %v58_v6  ;;  %v52_v12 = vld [vmem:[%s1200_s6] sm:$0xff] }
   0x8   :  { %v1141_v14 = vld [vmem:[%s1196_s2] sm:$0xff]  ;;  %v526_v18 = vsel %vm56_vm0, %v52_v12, 0  ;;  %v637_v35 = vsub.f32 %v54_v19, %v1156_v27 }
   0x9   :  { %v1126_v8 = vsub.f32 %v58_v6, %v1123_v7  ;;  %v1154_v26 = vand.u32 4294901760, %v526_v18  ;;  %v53_v28 = vld [vmem:[%s1195_s1] sm:$0xff]  ;;  %s1063_s1 = smov [#allocation2]  }
   0xa   :  { %v1161_v32 = vand.u32 4294901760, %v53_v28  ;;  %v638_v42 = vand.u32 4294901760, %v637_v35  ;;  %s1024_s20 = sshll.u32 %s1063_s1, 4  ;;  %s1025_s20 = int_to_ptr.vmem [resolvable:$true] %s1024_s20 }
   0xb   :  { %v129_v10 = vand.u32 4294901760, %v1126_v8  ;;  %v596_v36 = vsub.f32 %v526_v18, %v1154_v26  ;;  %s1039_s22 = scalar_lea.vmem %s1025_s20, 16  ;;  %s1043_s23 = scalar_lea.vmem %s1025_s20, 32 }
   0xc   :  { %v643_v39 = vsub.f32 %v53_v28, %v1161_v32  ;;  %v639_v47 = vsub.f32 %v637_v35, %v638_v42  ;;  %p1040_p0 = scmp.ne.s32.totalorder %s1025_s20, %s1039_s22  ;;  %p1044_p1 = scmp.lt.s32.totalorder %s1025_s20, %s1025_s20 }
   0xd   :  { %v130_v17 = vsub.f32 %v1126_v8, %v129_v10  ;;  %v597_v43 = vand.u32 4294901760, %v596_v36  ;;  %p1045_p2 = scmp.lt.s32.totalorder %s1043_s23, %s1039_s22 }
   0xe   :  { %v644_v46 = vand.u32 4294901760, %v643_v39  ;;  %v640_v50 = vand.u32 4294901760, %v639_v47 }
   0xf   :  { %v131_v31 = vand.u32 4294901760, %v130_v17  ;;  %v598_v48 = vsub.f32 %v596_v36, %v597_v43  ;;  %p1046_p3 = por %p1045_p2, %p1044_p1 }
  0x10   :  { %v645_v49 = vsub.f32 %v643_v39, %v644_v46 }
  0x11   :  { %v599_v51 = vand.u32 4294901760, %v598_v48  ;;  %p1047_p4 = pnand %p1046_p3, %p1040_p0 }
  0x12   :  { %v646_v52 = vand.u32 4294901760, %v645_v49 }
  0x7d   :  { %v38_v9 = vpop.permute.xlu0 %37 }
  0x7e   :  { %v40_v20 = vmul.f32 %v38_v9, %v33_v11  ;;  %v41_v21 = vmul.f32 %v38_v9, %v34_v13 }
  0x81   :  { %v46_v16 = vpop.permute.xlu0 %45 }
  0x82   :  { %v48_v22 = vmul.f32 %v46_v16, %v1141_v14  ;;  %v49_v23 = vmul.f32 %v46_v16, %v1146_v15 }
  0x84   :  { %v50_v24 = vadd.f32 %v48_v22, %v40_v20  ;;  %v51_v25 = vadd.f32 %v49_v23, %v41_v21 }
  0x86   :  { %v90_v29 = vand.u32 4294901760, %v51_v25  ;;  %v92_v30 = vand.u32 4294901760, %v50_v24 }
  0x88   :  { %v175_v33 = vsub.f32 %v50_v24, %v92_v30  ;;  %91 = vmatprep.subr.mxu0 %v90_v29  ;;  %v169_v34 = vsub.f32 %v51_v25, %v90_v29 }
  0x89   :  { %93 = vmatpush1.msra.mxu0 %v92_v30 }
  0x8a   :  { %132 = vmatmul.mubr.f32.vlgmr.msra.gmra.mxu0 %v131_v31  ;;  %252 = vmatprep.subr.mxu0 %v169_v34  ;;  %v170_v37 = vand.u32 4294901760, %v169_v34  ;;  %v176_v38 = vand.u32 4294901760, %v175_v33  ;;  %v997_v31 = vpop.permute.xlu1 %996 }
  0x8b   :  { %255 = vmatpush1.msra.mxu0 %v175_v33  ;;  %288 = vmatprep.mubr.f32.mxu0 %v1062_v3 }
  0x8c   :  { %406 = vmatprep.subr.mxu0 %v170_v37  ;;  %v171_v40 = vsub.f32 %v169_v34, %v170_v37  ;;  %v177_v41 = vsub.f32 %v175_v33, %v176_v38 }
  0x8e   :  { %291 = vmatmul.mubr.f32.vlgmr.msra.gmra.mxu0 %v1126_v8  ;;  %v172_v44 = vand.u32 4294901760, %v171_v40  ;;  %v178_v45 = vand.u32 4294901760, %v177_v41 }
  0x8f   :  { %410 = vmatpush1.msra.mxu0 %v176_v38  ;;  %443 = vmatprep.mubr.f32.mxu0 %v1062_v3 }
  0x90   :  { %173 = vmatprep.subr.mxu1 %v172_v44  ;;  %559 = vmatprep.subr.mxu0 %v1156_v27 }
  0x91   :  { %179 = vmatpush1.msra.mxu1 %v178_v45 }
  0x92   :  { %214 = vmatmul.mubr.f32.vlgmr.msra.gmra.mxu1 %v1123_v7  ;;  %328 = vmatprep.subr.mxu1 %v90_v29 }
  0x93   :  { %330 = vmatpush1.msra.mxu1 %v92_v30  ;;  %363 = vmatprep.mubr.f32.mxu1 %v1062_v3 }
  0x94   :  { %482 = vmatprep.subr.mxu1 %v90_v29  ;;  %445 = vmatmul.mubr.f32.vlgmr.msra.gmra.mxu0 %v1123_v7 }
  0x95   :  { %561 = vmatpush1.msra.mxu0 %v1161_v32  ;;  %594 = vmatprep.mubr.f32.mxu0 %v1062_v3 }
  0x96   :  { %367 = vmatmul.mubr.f32.vlgmr.msra.gmra.mxu1 %v129_v10  ;;  %720 = vmatprep.subr.mxu0 %v637_v35 }
  0x97   :  { %484 = vmatpush1.msra.mxu1 %v92_v30  ;;  %517 = vmatprep.mubr.f32.mxu1 %v1062_v3 }
  0x98   :  { %641 = vmatprep.subr.mxu1 %v640_v50  ;;  %600 = vmatmul.mubr.f32.vlgmr.msra.gmra.mxu0 %v599_v51 }
  0x99   :  { %723 = vmatpush1.msra.mxu0 %v643_v39  ;;  %756 = vmatprep.mubr.f32.mxu0 %v1062_v3 }
  0x9a   :  { %519 = vmatmul.mubr.f32.vlgmr.msra.gmra.mxu1 %v1123_v7  ;;  %874 = vmatprep.subr.mxu0 %v638_v42 }
  0x9b   :  { %647 = vmatpush1.msra.mxu1 %v646_v52  ;;  %680 = vmatprep.mubr.f32.mxu1 %v1062_v3 }
  0x9c   :  { %796 = vmatprep.subr.mxu1 %v1156_v27  ;;  %759 = vmatmul.mubr.f32.vlgmr.msra.gmra.mxu0 %v596_v36 }
  0x9d   :  { %878 = vmatpush1.msra.mxu0 %v644_v46  ;;  %911 = vmatprep.mubr.f32.mxu0 %v1062_v3 }
  0x9e   :  { %682 = vmatmul.mubr.f32.vlgmr.msra.gmra.mxu1 %v1154_v26 }
  0x9f   :  { %798 = vmatpush1.msra.mxu1 %v1161_v32  ;;  %831 = vmatprep.mubr.f32.mxu1 %v1062_v3 }
  0xa0   :  { %950 = vmatprep.subr.mxu1 %v1156_v27  ;;  %913 = vmatmul.mubr.f32.vlgmr.msra.gmra.mxu0 %v1154_v26 }
  0xa2   :  { %835 = vmatmul.mubr.f32.vlgmr.msra.gmra.mxu1 %v597_v43 }
  0xa3   :  { %952 = vmatpush1.msra.mxu1 %v1161_v32  ;;  %985 = vmatprep.mubr.f32.mxu1 %v1062_v3 }
  0xa6   :  { %987 = vmatmul.mubr.f32.vlgmr.msra.gmra.mxu1 %v1154_v26 }
 0x14a   :  { %v133_v53 = vpop.f32.mrf.mxu0 }
 0x14c   :  { %v135_v54 = vpop.f32.mrf.mxu0 }
 0x14e   :  { %v292_v55 = vpop.f32.mrf.mxu0 }
 0x150   :  { %v294_v56 = vpop.f32.mrf.mxu0 }
 0x152   :  { %v215_v57 = vpop.f32.mrf.mxu1 }
 0x153   :  { %v216_v58 = vadd.f32 %v215_v57, %v133_v53 }
 0x154   :  { %v217_v59 = vpop.f32.mrf.mxu1  ;;  %v446_v60 = vpop.f32.mrf.mxu0 }
 0x155   :  { %v293_v61 = vadd.f32 %v292_v55, %v216_v58  ;;  %v218_v62 = vadd.f32 %v217_v59, %v135_v54 }
 0x156   :  { %v368_v63 = vpop.f32.mrf.mxu1  ;;  %v448_v0 = vpop.f32.mrf.mxu0 }
 0x157   :  { %v295_v1 = vadd.f32 %v294_v56, %v218_v62  ;;  %v369_v2 = vadd.f32 %v368_v63, %v293_v61 }
 0x158   :  { %v370_v4 = vpop.f32.mrf.mxu1  ;;  %v601_v5 = vpop.f32.mrf.mxu0 }
 0x159   :  { %v447_v6 = vadd.f32 %v446_v60, %v369_v2  ;;  %v371_v3 = vadd.f32 %v370_v4, %v295_v1 }
 0x15a   :  { %v520_v7 = vpop.f32.mrf.mxu1  ;;  %v603_v8 = vpop.f32.mrf.mxu0 }
 0x15b   :  { %v449_v9 = vadd.f32 %v448_v0, %v371_v3  ;;  %v521_v10 = vadd.f32 %v520_v7, %v447_v6 }
 0x15c   :  { %v522_v11 = vpop.f32.mrf.mxu1  ;;  %v760_v12 = vpop.f32.mrf.mxu0 }
 0x15d   :  { %v602_v13 = vadd.f32 %v601_v5, %v521_v10  ;;  %v523_v16 = vadd.f32 %v522_v11, %v449_v9 }
 0x15e   :  { %v683_v17 = vpop.f32.mrf.mxu1  ;;  %v762_v18 = vpop.f32.mrf.mxu0 }
 0x15f   :  { %v604_v19 = vadd.f32 %v603_v8, %v523_v16  ;;  %v684_v20 = vadd.f32 %v683_v17, %v602_v13 }
 0x160   :  { %v685_v21 = vpop.f32.mrf.mxu1  ;;  %v914_v25 = vpop.f32.mrf.mxu0 }
 0x161   :  { %v761_v22 = vadd.f32 %v760_v12, %v684_v20  ;;  %v686_v23 = vadd.f32 %v685_v21, %v604_v19 }
 0x162   :  { %v836_v24 = vpop.f32.mrf.mxu1  ;;  %v916_v32 = vpop.f32.mrf.mxu0 }
 0x163   :  { %v763_v26 = vadd.f32 %v762_v18, %v686_v23  ;;  %v837_v27 = vadd.f32 %v836_v24, %v761_v22 }
 0x164   :  { %v838_v28 = vpop.f32.mrf.mxu1 }
 0x165   :  { %v915_v29 = vadd.f32 %v914_v25, %v837_v27  ;;  %v839_v30 = vadd.f32 %v838_v28, %v763_v26 }
 0x166   :  { %v988_v33 = vpop.f32.mrf.mxu1 }
 0x167   :  { %v917_v34 = vadd.f32 %v916_v32, %v839_v30  ;;  %v989_v35 = vadd.f32 %v988_v33, %v915_v29 }
 0x168   :  { %v990_v36 = vpop.f32.mrf.mxu1 }
 0x169   :  { %v999_v37 = vadd.f32 %v997_v31, %v989_v35  ;;  %v991_v38 = vadd.f32 %v990_v36, %v917_v34 }
 0x16b   :  { %v1001_v39 = vsub.f32 %v1141_v14, %v999_v37  ;;  %v1000_v40 = vadd.f32 %v997_v31, %v991_v38 }
 0x16d   :  { %v1002_v41 = vsub.f32 %v1146_v15, %v1000_v40  ;;  %v1003_v42 = vand.u32 2147483647, %v1001_v39 }
 0x16f   :  { %v1004_v43 = vand.u32 2147483647, %v1002_v41 }
 0x171   :  { %v1005_v44 = vadd.f32 %v1004_v43, %v1003_v42 }
 0x173   :  { %1006 = vadd.xlane.f32.xlu1 %v1005_v44 }
 0x1fc   :  { %v1007_v45 = vpop.xlane.xlu1 %1006 }
 0x1fd   :  { %v1008_v46 = vrot.slane %v1007_v45, 4 }
 0x1ff   :  { %v1009_v47 = vadd.f32 %v1008_v46, %v1007_v45 }
 0x201   :  { %v1010_v48 = vrot.slane %v1009_v47, 2 }
 0x203   :  { %v1011_v49 = vadd.f32 %v1010_v48, %v1009_v47 }
 0x205   :  { %v1012_v50 = vrot.slane %v1011_v49, 1 }
 0x207   :  { %v1013_v51 = vadd.f32 %v1012_v50, %v1011_v49 }
 0x209   :  { %1032 = vpush %v1013_v51 }
 0x23a   :  { %s1033_s21 = spop %1032 }
 0x23b   :  { %v1015_v14 = vstv %s1033_s21 }
 0x23c   :  { %1017 = vst.msk [vmem:[#allocation2] sm:$0x1] %vm1016_vm1, %v1015_v14 }
 0x23d   :  { %1050 = shalt.err (!%p1047_p4)
}
 0x23e   :  { %1027 = dma.vmem_to_hbm [thread:$0]  %s1025_s20, 16, %s1202_s8, [#allocation3]  }
 0x23f   :  { %1059 = dma.done.wait [#allocation3], 16  }
 0x240   :  { %1060 = vsyncadd [#allocation3], 4294967280 }
 0x241   :  { %1031 = vsyncpa [#allocation3], 1 }

</bundles_post_ra>
